<compile_context>
chip_gen: v7x
topology: tpu7x:2x2x1
jax: 0.10.0
libtpu: 0.0.40
codegen_flags: <defaults>
</compile_context>

<pallas_src>
import functools
import random

import numpy as np
import jax
import jax.numpy as jnp
from jax.experimental import pallas as pl
from jax.experimental.pallas import tpu as pltpu


# ----------------------------------------------------------------------------
# BlockMask construction (plain numpy / python, deterministic via random.seed)
# ----------------------------------------------------------------------------
def _regular_mask(size: int, occupancy: int) -> np.ndarray:
    mask = np.zeros((size, size), dtype=bool)
    for _ in range(occupancy):
        while True:
            new_indices = list(range(size))
            random.shuffle(new_indices)
            if any(mask[idx, col] for col, idx in enumerate(new_indices)):
                continue
            for col, idx in enumerate(new_indices):
                mask[idx, col] = True
            break
    return mask


def _tiled_regular_mask(size: int, occupancy: int, repeat) -> np.ndarray:
    mask = np.zeros((repeat[0] * size, repeat[1] * size), dtype=bool)
    for i in range(repeat[0]):
        for j in range(repeat[1]):
            mask[i * size:(i + 1) * size, j * size:(j + 1) * size] = _regular_mask(size, occupancy)
    row_indices = list(range(repeat[0] * size))
    col_indices = list(range(repeat[1] * size))
    random.shuffle(row_indices)
    random.shuffle(col_indices)
    mask = mask[row_indices, :][:, col_indices]
    return mask


def _build_data_indices(mask: np.ndarray) -> np.ndarray:
    num_rows, num_cols = mask.shape
    data_indices = np.full((num_rows, num_cols), -1, dtype=np.int32)
    idx = 0
    for col in range(num_cols):
        for row in range(num_rows):
            if mask[row, col]:
                data_indices[row, col] = idx
                idx += 1
    return data_indices


def _matmul_block_indices(mask: np.ndarray, data_indices: np.ndarray):
    """row_indices / data_indices compressed over the row (reduction) dim.

    Both have shape (col_occupancy, num_cols)."""
    num_rows, num_cols = mask.shape
    col_occupancy = int(mask.sum(axis=0)[0])
    indices = np.zeros((col_occupancy, num_cols), dtype=np.int32)
    for col in range(num_cols):
        idx = 0
        for row in range(num_rows):
            if mask[row, col]:
                indices[idx, col] = row
                idx += 1
    idx_ranged = np.tile(np.arange(num_cols), (col_occupancy, 1))
    return indices, data_indices[indices, idx_ranged].astype(np.int32)


# ----------------------------------------------------------------------------
# Pallas kernel
# ----------------------------------------------------------------------------
def _sparse_mm_kernel(row_idx_ref, a_ref, w_ref, o_ref, *, occupancy, block_size, group):
    """grid = (row_tiles, num_cols // group).

    a_ref : (tm, n_in)                 K-resident activation row tile
    w_ref : (group, occupancy*bs, bs)  contiguous sparse blocks of `group` columns
    o_ref : (tm, group*bs)             lane-dense output tile
    row_idx_ref : SMEM (occupancy, num_cols) scalar-prefetched K-block indices
    """
    j = pl.program_id(1)
    bs = block_size
    col_tiles = []
    for g in range(group):                      # static unroll, group in {1,2,4}
        col = j * group + g
        # Gather the `occupancy` K-blocks of A and fuse them into one operand so a
        # single MXU dot with K = occupancy*bs does the accumulation inside the
        # systolic array (no VPU f32 adds over an accumulator).
        a_parts = []
        for s in range(occupancy):              # static unroll (occupancy small)
            start = pl.multiple_of(row_idx_ref[s, col] * bs, bs)
            a_parts.append(a_ref[:, pl.ds(start, bs)])
        a_op = a_parts[0] if occupancy == 1 else jnp.concatenate(a_parts, axis=1)
        acc = jnp.dot(a_op, w_ref[g], preferred_element_type=jnp.float32)
        col_tiles.append(acc.astype(o_ref.dtype))
    # Single lane-dense store, group*bs lanes wide.
    o_ref[...] = col_tiles[0] if group == 1 else jnp.concatenate(col_tiles, axis=1)


def _pick_group(num_cols: int) -> int:
    for g in (4, 2, 1):
        if num_cols % g == 0:
            return g
    return 1


def block_sparse_matmul(x, weight_packed, row_indices, block_size: int,
                        n_out: int, *, tm=None):
    """x: (M, n_in); weight_packed: (num_cols, occupancy*bs, bs) pre-stacked
    per-column sparse blocks; row_indices: (occupancy, num_cols) int32
    (scalar-prefetched). Returns (M, n_out) in weight_packed.dtype."""
    M, n_in = x.shape
    bs = block_size
    num_cols = n_out // bs
    occupancy = int(row_indices.shape[0])
    out_dtype = weight_packed.dtype
    group = _pick_group(num_cols)

    x_isz = jnp.dtype(x.dtype).itemsize
    w_isz = jnp.dtype(weight_packed.dtype).itemsize
    o_isz = jnp.dtype(out_dtype).itemsize

    try:
        vmem_cap = int(pltpu.get_tpu_info().vmem_capacity_bytes)
    except Exception:
        vmem_cap = 64 << 20   # conservative default (v7x per-core VMEM)

    # VMEM-aware row-tile size. A (tm, n_in) is the dominant term; budget it as
    # double-buffered so the Buffered(1) fallback path still fits. In-kernel
    # temporaries (fused A operand, f32 acc, output staging) included per row.
    a_bufs = 2
    fixed_w = 2 * group * occupancy * bs * bs * w_isz
    tmp_per_row = occupancy * bs * x_isz + bs * 4 + group * bs * o_isz
    per_row = a_bufs * n_in * x_isz + 2 * group * bs * o_isz + tmp_per_row
    budget = int(0.65 * vmem_cap)
    tm_cap = max(128, ((budget - fixed_w) // max(per_row, 1)) // 128 * 128)
    hard_cap = 1024 if vmem_cap >= (96 << 20) else 512
    if tm is None:
        tm = min(hard_cap, tm_cap, 128 * pl.cdiv(M, 128))
    # TODO(synk): if tm_cap < 128 (huge n_in on 64 MiB VMEM) the K-resident A layout
    # should be replaced by an occupancy grid axis + fp32 VMEM scratch accumulator.

    grid = (pl.cdiv(M, tm), num_cols // group)

    need = (a_bufs * tm * n_in * x_isz + fixed_w
            + 2 * tm * group * bs * o_isz + tm * tmp_per_row + (16 << 20))
    vmem_limit = int(min(vmem_cap, max(need, 32 << 20)))

    kernel = functools.partial(_sparse_mm_kernel, occupancy=occupancy,
                               block_size=bs, group=group)

    def _run(a_pipeline_mode):
        if a_pipeline_mode is None:
            a_spec = pl.BlockSpec((tm, n_in), lambda i, j, ri: (i, 0))
        else:
            # A's block index changes only once per num_cols/group steps; single
            # buffer halves the dominant VMEM term (one exposed DMA per row tile).
            a_spec = pl.BlockSpec((tm, n_in), lambda i, j, ri: (i, 0),
                                  pipeline_mode=a_pipeline_mode)
        # One contiguous burst brings in all sparse blocks of `group` columns.
        w_spec = pl.BlockSpec((group, occupancy * bs, bs),
                              lambda i, j, ri: (j, 0, 0))
        o_spec = pl.BlockSpec((tm, group * bs), lambda i, j, ri: (i, j))
        out = pl.pallas_call(
            kernel,
            out_shape=jax.ShapeDtypeStruct((M, n_out), out_dtype),
            grid_spec=pltpu.PrefetchScalarGridSpec(
                num_scalar_prefetch=1,
                grid=grid,
                in_specs=[a_spec, w_spec],
                out_specs=o_spec,
            ),
            compiler_params=pltpu.CompilerParams(
                dimension_semantics=("parallel", "parallel"),
                vmem_limit_bytes=vmem_limit),
        )(row_indices, x, weight_packed)
        return jax.block_until_ready(out)

    try:
        return _run(pl.Buffered(1))
    except Exception:
        # Graceful fallback if single-buffering via pipeline_mode is not supported
        # by this jax/libtpu build; results are identical.
        return _run(None)


# ----------------------------------------------------------------------------
# SparseLinear module equivalent (parameter construction + forward wrapper)
# ----------------------------------------------------------------------------
class SparseLinearPallas:
    def __init__(self, n_in: int, n_out: int, block_size: int, occupancy: int,
                 dtype=jnp.bfloat16, key=None):
        assert n_in % block_size == 0
        assert n_out % block_size == 0
        self.n_in, self.n_out = n_in, n_out
        self.block_size, self.occupancy, self.dtype = block_size, occupancy, dtype

        n_blocks_in = n_in // block_size
        n_blocks_out = n_out // block_size
        size = min(n_blocks_in, n_blocks_out)
        repeat = (n_blocks_in // size, n_blocks_out // size)

        random.seed(0)  # deterministic mask
        self.mask = _tiled_regular_mask(size, occupancy, repeat)
        self._data_indices = _build_data_indices(self.mask)
        row_indices, data_indices = _matmul_block_indices(self.mask, self._data_indices)
        self.total_blocks = self.mask.shape[0] * int(self.mask.sum(axis=1)[0])

        # weight init (matches _init_weights)
        fan_in = n_in * (occupancy / (n_in // block_size))
        fan_out = n_out * (occupancy / (n_out // block_size))
        std = (2.0 / (fan_in + fan_out)) ** 0.5
        if key is None:
            key = jax.random.PRNGKey(0)
        # original compressed layout (block_size, block_size * total_blocks)
        self.weight = (std * jax.random.normal(
            key, (block_size, block_size * self.total_blocks),
            dtype=jnp.float32)).astype(dtype)

        self.row_indices = jnp.asarray(row_indices, dtype=jnp.int32)
        self.data_indices = jnp.asarray(data_indices, dtype=jnp.int32)

        # Repack weights once: (num_cols, col_occupancy*bs, bs) — each output
        # column's sparse blocks are contiguous in HBM and pre-stacked along K so
        # the kernel can do a single fused-K MXU dot per column.
        bs = block_size
        num_cols = n_out // bs
        col_occ = int(self.row_indices.shape[0])
        w_blocks = self.weight.reshape(bs, self.total_blocks, bs).transpose(1, 0, 2)
        packed = jnp.take(w_blocks, self.data_indices.T, axis=0)  # (num_cols, occ, bs, bs)
        self.weight_packed = packed.reshape(num_cols, col_occ * bs, bs)

    def get_full(self):
        """Dense equivalent of the block-sparse weight (for reference check)."""
        full = np.zeros((self.n_in, self.n_out), dtype=np.float32)
        data = np.asarray(self.weight, dtype=np.float32)
        ri = np.asarray(self.row_indices)
        di = np.asarray(self.data_indices)
        num_cols = self.n_out // self.block_size
        bs = self.block_size
        for col in range(num_cols):
            for r in range(ri.shape[0]):
                rs = ri[r, col] * bs
                cs = col * bs
                ds = di[r, col] * bs
                full[rs:rs + bs, cs:cs + bs] = data[:, ds:ds + bs]
        return full

    def __call__(self, x):
        return block_sparse_matmul(x, self.weight_packed, self.row_indices,
                                   self.block_size, self.n_out)


# ----------------------------------------------------------------------------
if __name__ == "__main__":
    key = jax.random.PRNGKey(0)
    k_w1, k_x1, k_w2, k_x2, k_w3, k_x3 = jax.random.split(key, 6)

    def _check(layer, x):
        out = jax.block_until_ready(layer(x))
        expected = np.asarray(x, dtype=np.float32) @ layer.get_full()
        np.testing.assert_allclose(np.asarray(out, dtype=np.float32), expected,
                                   rtol=5e-2, atol=5e-1)

    # --- case 1: tiny demo shapes (M=16, 256 -> 256, bs=128, occupancy=2) ---
    M, n_in, n_out, block_size, occupancy = 16, 256, 256, 128, 2
    layer = SparseLinearPallas(n_in, n_out, block_size, occupancy,
                               dtype=jnp.bfloat16, key=k_w1)
    x = jax.random.normal(k_x1, (M, n_in), dtype=jnp.float32).astype(jnp.bfloat16)
    _check(layer, x)

    # --- case 2: multiple / ragged row tiles, col_occupancy=4 (640, 512 -> 256) ---
    M, n_in, n_out, block_size, occupancy = 640, 512, 256, 128, 2
    layer = SparseLinearPallas(n_in, n_out, block_size, occupancy,
                               dtype=jnp.bfloat16, key=k_w2)
    x = jax.random.normal(k_x2, (M, n_in), dtype=jnp.float32).astype(jnp.bfloat16)
    _check(layer, x)

    # --- case 3: group=4 output columns per step, ragged M (200, 256 -> 512) ---
    M, n_in, n_out, block_size, occupancy = 200, 256, 512, 128, 2
    layer = SparseLinearPallas(n_in, n_out, block_size, occupancy,
                               dtype=jnp.bfloat16, key=k_w3)
    x = jax.random.normal(k_x3, (M, n_in), dtype=jnp.float32).astype(jnp.bfloat16)
    _check(layer, x)

    print("KERNEL_OK")
</pallas_src>

<mosaic_0001>
module attributes {stable_mosaic.version = 11 : i64} {
  func.func @_sparse_mm_kernel(%arg0: i32, %arg1: i32, %arg2: memref<2x2xi32, #tpu.memory_space<smem>>, %arg3: memref<128x256xbf16, #tpu.memory_space<vmem>>, %arg4: memref<2x256x128xbf16, #tpu.memory_space<vmem>>, %arg5: memref<128x256xbf16, #tpu.memory_space<vmem>>) attributes {dimension_semantics = [#tpu.dimension_semantics<parallel>, #tpu.dimension_semantics<parallel>], iteration_bounds = array<i64: 1, 1>, scalar_prefetch = 1 : i64, scratch_operands = 0 : i64, tpu.core_type = #tpu.core_type<tc>, window_params = [{pipeline_mode = #tpu.pipeline_mode<synchronous>, transform_indices = @transform_0, window_bounds = array<i64: 128, 256>}, {transform_indices = @transform_1, window_bounds = array<i64: 2, 256, 128>}, {transform_indices = @transform_2, window_bounds = array<i64: 128, 256>}]} {
    %c2_i32 = arith.constant 2 : i32
    %0 = arith.muli %arg1, %c2_i32 : i32
    %c0_i32 = arith.constant 0 : i32
    %1 = arith.addi %0, %c0_i32 : i32
    %c0 = arith.constant 0 : index
    %2 = arith.index_cast %1 : i32 to index
    %3 = memref.load %arg2[%c0, %2] : memref<2x2xi32, #tpu.memory_space<smem>>
    %c128_i32 = arith.constant 128 : i32
    %4 = arith.muli %3, %c128_i32 : i32
    %5 = tpu.assume_multiple %4, 128 : i32
    %c0_0 = arith.constant 0 : index
    %6 = arith.index_cast %5 : i32 to index
    %7 = vector.load %arg3[%c0_0, %6] : memref<128x256xbf16, #tpu.memory_space<vmem>>, vector<128x128xbf16>
    %c1 = arith.constant 1 : index
    %8 = arith.index_cast %1 : i32 to index
    %9 = memref.load %arg2[%c1, %8] : memref<2x2xi32, #tpu.memory_space<smem>>
    %c128_i32_1 = arith.constant 128 : i32
    %10 = arith.muli %9, %c128_i32_1 : i32
    %11 = tpu.assume_multiple %10, 128 : i32
    %c0_2 = arith.constant 0 : index
    %12 = arith.index_cast %11 : i32 to index
    %13 = vector.load %arg3[%c0_2, %12] : memref<128x256xbf16, #tpu.memory_space<vmem>>, vector<128x128xbf16>
    %14 = tpu.concatenate %7, %13 in 1 : vector<128x128xbf16>, vector<128x128xbf16> -> vector<128x256xbf16>
    %c0_3 = arith.constant 0 : index
    %c0_4 = arith.constant 0 : index
    %c0_5 = arith.constant 0 : index
    %15 = vector.load %arg4[%c0_3, %c0_4, %c0_5] : memref<2x256x128xbf16, #tpu.memory_space<vmem>>, vector<1x256x128xbf16>
    %16 = vector.shape_cast %15 : vector<1x256x128xbf16> to vector<256x128xbf16>
    %cst = arith.constant dense<0.000000e+00> : vector<128x128xf32>
    %17 = tpu.matmul %14, %16, %cst {dimension_numbers = #tpu.dot_dimension_numbers<[1], [0], [0], [1], [0, 0, 1, 1], [], []>} : vector<128x256xbf16>, vector<256x128xbf16>, vector<128x128xf32> -> vector<128x128xf32>
    %18 = arith.truncf %17 : vector<128x128xf32> to vector<128x128xbf16>
    %c2_i32_6 = arith.constant 2 : i32
    %19 = arith.muli %arg1, %c2_i32_6 : i32
    %c1_i32 = arith.constant 1 : i32
    %20 = arith.addi %19, %c1_i32 : i32
    %c0_7 = arith.constant 0 : index
    %21 = arith.index_cast %20 : i32 to index
    %22 = memref.load %arg2[%c0_7, %21] : memref<2x2xi32, #tpu.memory_space<smem>>
    %c128_i32_8 = arith.constant 128 : i32
    %23 = arith.muli %22, %c128_i32_8 : i32
    %24 = tpu.assume_multiple %23, 128 : i32
    %c0_9 = arith.constant 0 : index
    %25 = arith.index_cast %24 : i32 to index
    %26 = vector.load %arg3[%c0_9, %25] : memref<128x256xbf16, #tpu.memory_space<vmem>>, vector<128x128xbf16>
    %c1_10 = arith.constant 1 : index
    %27 = arith.index_cast %20 : i32 to index
    %28 = memref.load %arg2[%c1_10, %27] : memref<2x2xi32, #tpu.memory_space<smem>>
    %c128_i32_11 = arith.constant 128 : i32
    %29 = arith.muli %28, %c128_i32_11 : i32
    %30 = tpu.assume_multiple %29, 128 : i32
    %c0_12 = arith.constant 0 : index
    %31 = arith.index_cast %30 : i32 to index
    %32 = vector.load %arg3[%c0_12, %31] : memref<128x256xbf16, #tpu.memory_space<vmem>>, vector<128x128xbf16>
    %33 = tpu.concatenate %26, %32 in 1 : vector<128x128xbf16>, vector<128x128xbf16> -> vector<128x256xbf16>
    %c1_13 = arith.constant 1 : index
    %c0_14 = arith.constant 0 : index
    %c0_15 = arith.constant 0 : index
    %34 = vector.load %arg4[%c1_13, %c0_14, %c0_15] : memref<2x256x128xbf16, #tpu.memory_space<vmem>>, vector<1x256x128xbf16>
    %35 = vector.shape_cast %34 : vector<1x256x128xbf16> to vector<256x128xbf16>
    %cst_16 = arith.constant dense<0.000000e+00> : vector<128x128xf32>
    %36 = tpu.matmul %33, %35, %cst_16 {dimension_numbers = #tpu.dot_dimension_numbers<[1], [0], [0], [1], [0, 0, 1, 1], [], []>} : vector<128x256xbf16>, vector<256x128xbf16>, vector<128x128xf32> -> vector<128x128xf32>
    %37 = arith.truncf %36 : vector<128x128xf32> to vector<128x128xbf16>
    %38 = tpu.concatenate %18, %37 in 1 : vector<128x128xbf16>, vector<128x128xbf16> -> vector<128x256xbf16>
    %c0_17 = arith.constant 0 : index
    %c0_18 = arith.constant 0 : index
    %39 = vector.load %arg5[%c0_17, %c0_18] : memref<128x256xbf16, #tpu.memory_space<vmem>>, vector<128x256xbf16>
    tpu.vector_store %arg5[%c0_17, %c0_18], %38 {strides = array<i32>} : memref<128x256xbf16, #tpu.memory_space<vmem>>, vector<128x256xbf16>,
    return
  }
  func.func @transform_0(%arg0: i32, %arg1: i32, %arg2: memref<2x2xi32, #tpu.memory_space<smem>>) -> (i32, i32) {
    %c0_i32 = arith.constant 0 : i32
    %c0_i32_0 = arith.constant 0 : i32
    return %arg0, %c0_i32 : i32, i32
  }
  func.func @transform_1(%arg0: i32, %arg1: i32, %arg2: memref<2x2xi32, #tpu.memory_space<smem>>) -> (i32, i32, i32) {
    %c0_i32 = arith.constant 0 : i32
    %c0_i32_0 = arith.constant 0 : i32
    %c0_i32_1 = arith.constant 0 : i32
    return %arg1, %c0_i32, %c0_i32_0 : i32, i32, i32
  }
  func.func @transform_2(%arg0: i32, %arg1: i32, %arg2: memref<2x2xi32, #tpu.memory_space<smem>>) -> (i32, i32) {
    %c0_i32 = arith.constant 0 : i32
    return %arg0, %arg1 : i32, i32
  }
}

module attributes {stable_mosaic.version = 11 : i64} {
  func.func @_sparse_mm_kernel(%arg0: i32, %arg1: i32, %arg2: memref<2x2xi32, #tpu.memory_space<smem>>, %arg3: memref<128x256xbf16, #tpu.memory_space<vmem>>, %arg4: memref<2x256x128xbf16, #tpu.memory_space<vmem>>, %arg5: memref<128x256xbf16, #tpu.memory_space<vmem>>) attributes {dimension_semantics = [#tpu.dimension_semantics<parallel>, #tpu.dimension_semantics<parallel>], iteration_bounds = array<i64: 1, 1>, scalar_prefetch = 1 : i64, scratch_operands = 0 : i64, tpu.core_type = #tpu.core_type<tc>, window_params = [{transform_indices = @transform_0, window_bounds = array<i64: 128, 256>}, {transform_indices = @transform_1, window_bounds = array<i64: 2, 256, 128>}, {transform_indices = @transform_2, window_bounds = array<i64: 128, 256>}]} {
    %c2_i32 = arith.constant 2 : i32
    %0 = arith.muli %arg1, %c2_i32 : i32
    %c0_i32 = arith.constant 0 : i32
    %1 = arith.addi %0, %c0_i32 : i32
    %c0 = arith.constant 0 : index
    %2 = arith.index_cast %1 : i32 to index
    %3 = memref.load %arg2[%c0, %2] : memref<2x2xi32, #tpu.memory_space<smem>>
    %c128_i32 = arith.constant 128 : i32
    %4 = arith.muli %3, %c128_i32 : i32
    %5 = tpu.assume_multiple %4, 128 : i32
    %c0_0 = arith.constant 0 : index
    %6 = arith.index_cast %5 : i32 to index
    %7 = vector.load %arg3[%c0_0, %6] : memref<128x256xbf16, #tpu.memory_space<vmem>>, vector<128x128xbf16>
    %c1 = arith.constant 1 : index
    %8 = arith.index_cast %1 : i32 to index
    %9 = memref.load %arg2[%c1, %8] : memref<2x2xi32, #tpu.memory_space<smem>>
    %c128_i32_1 = arith.constant 128 : i32
    %10 = arith.muli %9, %c128_i32_1 : i32
    %11 = tpu.assume_multiple %10, 128 : i32
    %c0_2 = arith.constant 0 : index
    %12 = arith.index_cast %11 : i32 to index
    %13 = vector.load %arg3[%c0_2, %12] : memref<128x256xbf16, #tpu.memory_space<vmem>>, vector<128x128xbf16>
    %14 = tpu.concatenate %7, %13 in 1 : vector<128x128xbf16>, vector<128x128xbf16> -> vector<128x256xbf16>
    %c0_3 = arith.constant 0 : index
    %c0_4 = arith.constant 0 : index
    %c0_5 = arith.constant 0 : index
    %15 = vector.load %arg4[%c0_3, %c0_4, %c0_5] : memref<2x256x128xbf16, #tpu.memory_space<vmem>>, vector<1x256x128xbf16>
    %16 = vector.shape_cast %15 : vector<1x256x128xbf16> to vector<256x128xbf16>
    %cst = arith.constant dense<0.000000e+00> : vector<128x128xf32>
    %17 = tpu.matmul %14, %16, %cst {dimension_numbers = #tpu.dot_dimension_numbers<[1], [0], [0], [1], [0, 0, 1, 1], [], []>} : vector<128x256xbf16>, vector<256x128xbf16>, vector<128x128xf32> -> vector<128x128xf32>
    %18 = arith.truncf %17 : vector<128x128xf32> to vector<128x128xbf16>
    %c2_i32_6 = arith.constant 2 : i32
    %19 = arith.muli %arg1, %c2_i32_6 : i32
    %c1_i32 = arith.constant 1 : i32
    %20 = arith.addi %19, %c1_i32 : i32
    %c0_7 = arith.constant 0 : index
    %21 = arith.index_cast %20 : i32 to index
    %22 = memref.load %arg2[%c0_7, %21] : memref<2x2xi32, #tpu.memory_space<smem>>
    %c128_i32_8 = arith.constant 128 : i32
    %23 = arith.muli %22, %c128_i32_8 : i32
    %24 = tpu.assume_multiple %23, 128 : i32
    %c0_9 = arith.constant 0 : index
    %25 = arith.index_cast %24 : i32 to index
    %26 = vector.load %arg3[%c0_9, %25] : memref<128x256xbf16, #tpu.memory_space<vmem>>, vector<128x128xbf16>
    %c1_10 = arith.constant 1 : index
    %27 = arith.index_cast %20 : i32 to index
    %28 = memref.load %arg2[%c1_10, %27] : memref<2x2xi32, #tpu.memory_space<smem>>
    %c128_i32_11 = arith.constant 128 : i32
    %29 = arith.muli %28, %c128_i32_11 : i32
    %30 = tpu.assume_multiple %29, 128 : i32
    %c0_12 = arith.constant 0 : index
    %31 = arith.index_cast %30 : i32 to index
    %32 = vector.load %arg3[%c0_12, %31] : memref<128x256xbf16, #tpu.memory_space<vmem>>, vector<128x128xbf16>
    %33 = tpu.concatenate %26, %32 in 1 : vector<128x128xbf16>, vector<128x128xbf16> -> vector<128x256xbf16>
    %c1_13 = arith.constant 1 : index
    %c0_14 = arith.constant 0 : index
    %c0_15 = arith.constant 0 : index
    %34 = vector.load %arg4[%c1_13, %c0_14, %c0_15] : memref<2x256x128xbf16, #tpu.memory_space<vmem>>, vector<1x256x128xbf16>
    %35 = vector.shape_cast %34 : vector<1x256x128xbf16> to vector<256x128xbf16>
    %cst_16 = arith.constant dense<0.000000e+00> : vector<128x128xf32>
    %36 = tpu.matmul %33, %35, %cst_16 {dimension_numbers = #tpu.dot_dimension_numbers<[1], [0], [0], [1], [0, 0, 1, 1], [], []>} : vector<128x256xbf16>, vector<256x128xbf16>, vector<128x128xf32> -> vector<128x128xf32>
    %37 = arith.truncf %36 : vector<128x128xf32> to vector<128x128xbf16>
    %38 = tpu.concatenate %18, %37 in 1 : vector<128x128xbf16>, vector<128x128xbf16> -> vector<128x256xbf16>
    %c0_17 = arith.constant 0 : index
    %c0_18 = arith.constant 0 : index
    %39 = vector.load %arg5[%c0_17, %c0_18] : memref<128x256xbf16, #tpu.memory_space<vmem>>, vector<128x256xbf16>
    tpu.vector_store %arg5[%c0_17, %c0_18], %38 {strides = array<i32>} : memref<128x256xbf16, #tpu.memory_space<vmem>>, vector<128x256xbf16>,
    return
  }
  func.func @transform_0(%arg0: i32, %arg1: i32, %arg2: memref<2x2xi32, #tpu.memory_space<smem>>) -> (i32, i32) {
    %c0_i32 = arith.constant 0 : i32
    %c0_i32_0 = arith.constant 0 : i32
    return %arg0, %c0_i32 : i32, i32
  }
  func.func @transform_1(%arg0: i32, %arg1: i32, %arg2: memref<2x2xi32, #tpu.memory_space<smem>>) -> (i32, i32, i32) {
    %c0_i32 = arith.constant 0 : i32
    %c0_i32_0 = arith.constant 0 : i32
    %c0_i32_1 = arith.constant 0 : i32
    return %arg1, %c0_i32, %c0_i32_0 : i32, i32, i32
  }
  func.func @transform_2(%arg0: i32, %arg1: i32, %arg2: memref<2x2xi32, #tpu.memory_space<smem>>) -> (i32, i32) {
    %c0_i32 = arith.constant 0 : i32
    return %arg0, %arg1 : i32, i32
  }
}

</mosaic_0001>

<bundles_post_ra>
// kernel: tpu_custom_call.1
= control target key start
LH: loop header
LB: loop body
LE: loop exit
PB: predicated region body
PF: predicated region fallthrough
CT: control target
= control target key end

     0   :  { %s1461_s0 = inlined_call_operand.hbm [shape: s32[2,2], index: 0, kind: input, shape index: {}]   ;;  %s1462_s1 = inlined_call_operand.hbm [shape: bf16[16,256], index: 1, kind: input, shape index: {}]   ;;  %s1463_s2 = inlined_call_operand.hbm [shape: bf16[2,256,128], index: 2, kind: input, shape index: {}]   ;;  %s1464_s3 = inlined_call_operand.hbm [shape: bf16[16,256], index: 3, kind: output, shape index: {}]  }
   0x1   :  { %s1238_s14 = scalar_lea.hbm %s1461_s0, 32 }
   0x2   :  { %p1239_p0 = scmp.ne.s32.totalorder %s1461_s0, %s1238_s14  ;;  %p1242_p1 = scmp.lt.u32.totalorder %s1238_s14, %s1461_s0 }
   0x4   :  { %p1244_p2 = pnand %p1242_p1, %p1239_p0 }
   0x6   :  { %1247 = shalt.err (!%p1244_p2)  }
   0x7   :  { %s1322_s19 = smov [#allocation3]  }
   0x8   :  { %9 = dma.hbm_to_smem %s1461_s0, 32, %s1322_s19, [#allocation2] }
   0x9   :  { %1314 = dma.done.wait [#allocation2], 32 }
   0xa   :  { %1315 = vsyncadd [#allocation2], 4294967264 }
   0xb   :  { %11 = sfence }
   0xc   :  { %12 = vsyncpa [#allocation5], 0 }
   0xd   :  { %13 = vsyncpa [#allocation8], 0 }
   0xe   :  { %14 = vsyncpa [#allocation6], 0 }
   0xf   :  { %19 = vsyncadd [#allocation5], 1792  ;;  %s1323_s22 = smov [#allocation4]   ;;  %s1248_s26 = scalar_lea.hbm %s1462_s1, 256 }
  0x10   :  { %s20_s23 = sshll.u32 %s1323_s22, 4  ;;  %p1249_p3 = scmp.ne.s32.totalorder %s1462_s1, %s1248_s26  ;;  %s21_s23 = int_to_ptr.vmem [resolvable:$true] %s20_s23 }
  0x11   :  { %p1252_p4 = scmp.lt.u32.totalorder %s1248_s26, %s1462_s1 }
  0x13   :  { %p1254_p5 = pnand %p1252_p4, %p1249_p3 }
  0x15   :  { %1257 = shalt.err (!%p1254_p5)
}
  0x16   :  { %s1258_s30 = scalar_lea.vmem %s21_s23, 256  ;;  %s1262_s4 = scalar_lea.vmem %s21_s23, 2048 }
  0x17   :  { %p1259_p6 = scmp.ne.s32.totalorder %s21_s23, %s1258_s30  ;;  %p1263_p7 = scmp.lt.s32.totalorder %s21_s23, %s21_s23 }
  0x18   :  { %p1264_p8 = scmp.lt.s32.totalorder %s1262_s4, %s1258_s30 }
  0x1a   :  { %p1265_p9 = por %p1264_p8, %p1263_p7 }
  0x1c   :  { %p1266_p10 = pnand %p1265_p9, %p1259_p6 }
  0x1e   :  { %1269 = shalt.err (!%p1266_p10)
}
  0x1f   :  { %s1324_s5 = smov 128   ;;  %s1325_s6 = smov 8  }
  0x20   :  { %26 = dma.hbm_to_vmem [thread:$0]  %s1462_s1, 256, %s21_s23, [#allocation5], %s1324_s5, %s1324_s5, %s1325_s6  }
  0x21   :  { %s1326_s9 = smov [#allocation7]   ;;  %s1270_s13 = scalar_lea.hbm %s1463_s2, 4096 }
  0x22   :  { %s32_s10 = sshll.u32 %s1326_s9, 4  ;;  %p1271_p11 = scmp.ne.s32.totalorder %s1463_s2, %s1270_s13  ;;  %s33_s10 = int_to_ptr.vmem [resolvable:$true] %s32_s10 }
  0x23   :  { %p1274_p12 = scmp.lt.u32.totalorder %s1270_s13, %s1463_s2 }
  0x25   :  { %p1276_p13 = pnand %p1274_p12, %p1271_p11 }
  0x27   :  { %1279 = shalt.err (!%p1276_p13)
}
  0x28   :  { %s1280_s18 = scalar_lea.vmem %s33_s10, 4096  ;;  %p1285_p1 = scmp.lt.s32.totalorder %s33_s10, %s33_s10 }
  0x29   :  { %p1281_p0 = scmp.ne.s32.totalorder %s33_s10, %s1280_s18  ;;  %p1286_p2 = scmp.lt.s32.totalorder %s1280_s18, %s1280_s18 }
  0x2b   :  { %p1287_p3 = por %p1286_p2, %p1285_p1 }
  0x2d   :  { %p1288_p4 = pnand %p1287_p3, %p1281_p0 }
  0x2f   :  { %1291 = shalt.err (!%p1288_p4)
}
  0x30   :  { %s1327_s1 = smov 64   ;;  %s1328_s19 = smov 4  }
  0x31   :  { %38 = dma.hbm_to_vmem [thread:$0]  %s1463_s2, 4096, %s33_s10, [#allocation8], %s1327_s1, %s1327_s1, %s1328_s19  }
  0x32   :  { %1316 = dma.done.wait [#allocation5], 2048  }
  0x33   :  { %1317 = vsyncadd [#allocation5], 4294965248 }
  0x34   :  { %1318 = dma.done.wait [#allocation8], 4096  }
  0x35   :  { %1319 = vsyncadd [#allocation8], 4294963200  ;;  %s1389_s22 = sld [smem:[#allocation3 + $0x80]]  ;;  %s1391_s23 = sld [smem:[#allocation3 + $0x81]]  ;;  %v1174_v0 = vld [vmem:[#allocation7 + $0x40] sm:$0xff]   ;;  %v1178_v4 = vld [vmem:[#allocation7 + $0x48] sm:$0xff]  }
  0x36   :  { %s1393_s24 = sld [smem:[#allocation3]]  ;;  %s1395_s25 = sld [smem:[#allocation3 + $0x1]]  ;;  %v1175_v1 = vld [vmem:[#allocation7 + $0xc0] sm:$0xff]   ;;  %1038 = vmatprep.subr.bf16.mxu0 %v1174_v0  ;;  %v1179_v5 = vld [vmem:[#allocation7 + $0xc8] sm:$0xff]   ;;  %v1182_v8 = vld [vmem:[#allocation7 + $0x50] sm:$0xff]  }
  0x37   :  { %v1176_v2 = vld [vmem:[#allocation7] sm:$0xff]   ;;  %1102 = vmatprep.subr.bf16.mxu1 %v1175_v1  ;;  %v1180_v6 = vld [vmem:[#allocation7 + $0x8] sm:$0xff]   ;;  %v1183_v9 = vld [vmem:[#allocation7 + $0xd0] sm:$0xff]  }
  0x38   :  { %v1177_v3 = vld [vmem:[#allocation7 + $0x80] sm:$0xff]   ;;  %1039 = vmatpush3.bf16.msra.mxu0 %v1176_v2  ;;  %v1181_v7 = vld [vmem:[#allocation7 + $0x88] sm:$0xff]   ;;  %v1184_v10 = vld [vmem:[#allocation7 + $0x10] sm:$0xff]  }
  0x39   :  { %1103 = vmatpush3.bf16.msra.mxu1 %v1177_v3  ;;  %1040 = vmatprep.subr.bf16.mxu0 %v1178_v4  ;;  %v1185_v11 = vld [vmem:[#allocation7 + $0x90] sm:$0xff]   ;;  %v1186_v12 = vld [vmem:[#allocation7 + $0x58] sm:$0xff]   ;;  %v1190_v16 = vld [vmem:[#allocation7 + $0x60] sm:$0xff]  }
  0x3a   :  { %1104 = vmatprep.subr.bf16.mxu1 %v1179_v5  ;;  %v1187_v13 = vld [vmem:[#allocation7 + $0xd8] sm:$0xff]   ;;  %v1191_v17 = vld [vmem:[#allocation7 + $0xe0] sm:$0xff]   ;;  %v1194_v20 = vld [vmem:[#allocation7 + $0x68] sm:$0xff]  }
  0x3b   :  { %s934_s2 = sshll.u32 %s1389_s22, 7  ;;  %v1188_v14 = vld [vmem:[#allocation7 + $0x18] sm:$0xff]   ;;  %v1192_v18 = vld [vmem:[#allocation7 + $0x20] sm:$0xff]   ;;  %s972_s28 = sshll.u32 %s1391_s23, 7  ;;  %v1195_v21 = vld [vmem:[#allocation7 + $0xe8] sm:$0xff]  }
  0x3c   :  { %1041 = vmatpush3.bf16.msra.mxu0 %v1180_v6  ;;  %s1398_s26 = sshra.s32 %s934_s2, 7  ;;  %v1189_v15 = vld [vmem:[#allocation7 + $0x98] sm:$0xff]   ;;  %v1193_v19 = vld [vmem:[#allocation7 + $0xa0] sm:$0xff]   ;;  %s931_s29 = sshll.u32 %s1393_s24, 7  ;;  %v1196_v22 = vld [vmem:[#allocation7 + $0x28] sm:$0xff]  }
  0x3d   :  { %1105 = vmatpush3.bf16.msra.mxu1 %v1181_v7  ;;  %1042 = vmatprep.subr.bf16.mxu0 %v1182_v8  ;;  %s935_s27 = sshll.u32 %s1398_s26, 2  ;;  %s969_s0 = sshll.u32 %s1395_s25, 7  ;;  %v1197_v23 = vld [vmem:[#allocation7 + $0xa8] sm:$0xff]   ;;  %v1198_v24 = vld [vmem:[#allocation7 + $0x70] sm:$0xff]   ;;  %v1202_v28 = vld [vmem:[#allocation7 + $0x78] sm:$0xff]  }
  0x3e   :  { %1106 = vmatprep.subr.bf16.mxu1 %v1183_v9  ;;  %s459_s30 = sshra.s32 %s972_s28, 7  ;;  %s49_s4 = sshra.s32 %s931_s29, 7  ;;  %v1199_v25 = vld [vmem:[#allocation7 + $0xf0] sm:$0xff]   ;;  %v1203_v29 = vld [vmem:[#allocation7 + $0xf8] sm:$0xff]  }
  0x3f   :  { %s430_s7 = sshra.s32 %s969_s0, 7  ;;  %v1200_v26 = vld [vmem:[#allocation7 + $0x30] sm:$0xff]   ;;  %s973_s8 = sshll.u32 %s459_s30, 2  ;;  %v1204_v30 = vld [vmem:[#allocation7 + $0x38] sm:$0xff]  }
  0x40   :  { %1043 = vmatpush3.bf16.msra.mxu0 %v1184_v10  ;;  %v1201_v27 = vld [vmem:[#allocation7 + $0xb0] sm:$0xff]   ;;  %s932_s9 = sshll.u32 %s49_s4, 2  ;;  %s970_s10 = sshll.u32 %s430_s7, 2  ;;  %v1205_v31 = vld [vmem:[#allocation7 + $0xb8] sm:$0xff]  }
  0x41   :  { %1107 = vmatpush3.bf16.msra.mxu1 %v1185_v11  ;;  %1044 = vmatprep.subr.bf16.mxu0 %v1186_v12  ;;  %s1406_s11 = scalar_lea.vmem [#allocation4], %s935_s27  ;;  %s1409_s12 = scalar_lea.vmem [#allocation4], %s973_s8 }
  0x42   :  { %1108 = vmatprep.subr.bf16.mxu1 %v1187_v13  ;;  %v1206_v32 = vld [vmem:[%s1406_s11] ss:$8 sps:$4 sm:$0xff]   ;;  %s1412_s13 = scalar_lea.vmem [#allocation4], %s932_s9  ;;  %s1415_s14 = scalar_lea.vmem [#allocation4], %s970_s10  ;;  %v1210_v36 = vld [vmem:[%s1406_s11 + $0x10] ss:$8 sps:$4 sm:$0xff]  }
  0x43   :  { %v1207_v33 = vld [vmem:[%s1409_s12] ss:$8 sps:$4 sm:$0xff]   ;;  %354 = vmatprep.mubr.bf16.mxu0 %v1206_v32  ;;  %v1211_v37 = vld [vmem:[%s1409_s12 + $0x10] ss:$8 sps:$4 sm:$0xff]  }
  0x44   :  { %1045 = vmatpush3.bf16.msra.mxu0 %v1188_v14  ;;  %v1208_v34 = vld [vmem:[%s1412_s13] ss:$8 sps:$4 sm:$0xff]   ;;  %736 = vmatprep.mubr.bf16.mxu1 %v1207_v33  ;;  %v1212_v38 = vld [vmem:[%s1412_s13 + $0x10] ss:$8 sps:$4 sm:$0xff]  }
  0x45   :  { %1109 = vmatpush3.bf16.msra.mxu1 %v1189_v15  ;;  %1046 = vmatprep.subr.bf16.mxu0 %v1190_v16  ;;  %v1209_v35 = vld [vmem:[%s1415_s14] ss:$8 sps:$4 sm:$0xff]   ;;  %v1213_v39 = vld [vmem:[%s1415_s14 + $0x10] ss:$8 sps:$4 sm:$0xff]  }
  0x46   :  { %1110 = vmatprep.subr.bf16.mxu1 %v1191_v17  ;;  %v1214_v40 = vld [vmem:[%s1406_s11 + $0x20] ss:$8 sps:$4 sm:$0xff]   ;;  %v1218_v44 = vld [vmem:[%s1406_s11 + $0x30] ss:$8 sps:$4 sm:$0xff]  }
  0x47   :  { %v1215_v41 = vld [vmem:[%s1409_s12 + $0x20] ss:$8 sps:$4 sm:$0xff]   ;;  %v1219_v45 = vld [vmem:[%s1409_s12 + $0x30] ss:$8 sps:$4 sm:$0xff]  }
  0x48   :  { %1047 = vmatpush3.bf16.msra.mxu0 %v1192_v18  ;;  %v1216_v42 = vld [vmem:[%s1412_s13 + $0x20] ss:$8 sps:$4 sm:$0xff]   ;;  %v1220_v46 = vld [vmem:[%s1412_s13 + $0x30] ss:$8 sps:$4 sm:$0xff]  }
  0x49   :  { %1111 = vmatpush3.bf16.msra.mxu1 %v1193_v19  ;;  %1048 = vmatprep.subr.bf16.mxu0 %v1194_v20  ;;  %v1217_v43 = vld [vmem:[%s1415_s14 + $0x20] ss:$8 sps:$4 sm:$0xff]   ;;  %v1221_v47 = vld [vmem:[%s1415_s14 + $0x30] ss:$8 sps:$4 sm:$0xff]  }
  0x4a   :  { %1112 = vmatprep.subr.bf16.mxu1 %v1195_v21  ;;  %v1222_v48 = vld [vmem:[%s1406_s11 + $0x40] ss:$8 sps:$4 sm:$0xff]   ;;  %v1226_v52 = vld [vmem:[%s1406_s11 + $0x50] ss:$8 sps:$4 sm:$0xff]  }
  0x4b   :  { %v1223_v49 = vld [vmem:[%s1409_s12 + $0x40] ss:$8 sps:$4 sm:$0xff]   ;;  %v1227_v53 = vld [vmem:[%s1409_s12 + $0x50] ss:$8 sps:$4 sm:$0xff]  }
  0x4c   :  { %1049 = vmatpush3.bf16.msra.mxu0 %v1196_v22  ;;  %v1224_v50 = vld [vmem:[%s1412_s13 + $0x40] ss:$8 sps:$4 sm:$0xff]   ;;  %v1228_v54 = vld [vmem:[%s1412_s13 + $0x50] ss:$8 sps:$4 sm:$0xff]  }
  0x4d   :  { %1113 = vmatpush3.bf16.msra.mxu1 %v1197_v23  ;;  %1050 = vmatprep.subr.bf16.mxu0 %v1198_v24  ;;  %v1225_v51 = vld [vmem:[%s1415_s14 + $0x40] ss:$8 sps:$4 sm:$0xff]   ;;  %v1229_v55 = vld [vmem:[%s1415_s14 + $0x50] ss:$8 sps:$4 sm:$0xff]  }
  0x4e   :  { %1114 = vmatprep.subr.bf16.mxu1 %v1199_v25  ;;  %v1230_v56 = vld [vmem:[%s1406_s11 + $0x60] ss:$8 sps:$4 sm:$0xff]   ;;  %v1234_v60 = vld [vmem:[%s1406_s11 + $0x70] ss:$8 sps:$4 sm:$0xff]  }
  0x4f   :  { %v1231_v57 = vld [vmem:[%s1409_s12 + $0x60] ss:$8 sps:$4 sm:$0xff]   ;;  %v1235_v61 = vld [vmem:[%s1409_s12 + $0x70] ss:$8 sps:$4 sm:$0xff]  }
  0x50   :  { %1051 = vmatpush3.bf16.msra.mxu0 %v1200_v26  ;;  %v1232_v58 = vld [vmem:[%s1412_s13 + $0x60] ss:$8 sps:$4 sm:$0xff]   ;;  %v1236_v62 = vld [vmem:[%s1412_s13 + $0x70] ss:$8 sps:$4 sm:$0xff]  }
  0x51   :  { %1115 = vmatpush3.bf16.msra.mxu1 %v1201_v27  ;;  %1052 = vmatprep.subr.bf16.mxu0 %v1202_v28  ;;  %v1233_v59 = vld [vmem:[%s1415_s14 + $0x60] ss:$8 sps:$4 sm:$0xff]   ;;  %v1237_v63 = vld [vmem:[%s1415_s14 + $0x70] ss:$8 sps:$4 sm:$0xff]  }
  0x52   :  { %1116 = vmatprep.subr.bf16.mxu1 %v1203_v29 }
  0x54   :  { %1053 = vmatpush3.bf16.msra.mxu0 %v1204_v30 }
  0x55   :  { %1117 = vmatpush3.bf16.msra.mxu1 %v1205_v31 }
  0x57   :  { %355 = vmatmul.mubr.bf16.vlgmr.msra.gmra.mrb[0].mxu0 %v1208_v34 }
  0x58   :  { %737 = vmatmul.mubr.bf16.vlgmr.msra.gmra.mrb[0].mxu1 %v1209_v35  ;;  %362 = vmatprep.mubr.bf16.mxu0 %v1210_v36 }
  0x59   :  { %744 = vmatprep.mubr.bf16.mxu1 %v1211_v37 }
  0x5f   :  { %363 = vmatmul.mubr.bf16.gmra.mrb[4].mxu0 %v1212_v38 }
  0x60   :  { %745 = vmatmul.mubr.bf16.gmra.mrb[4].mxu1 %v1213_v39  ;;  %370 = vmatprep.mubr.bf16.mxu0 %v1214_v40 }
  0x61   :  { %752 = vmatprep.mubr.bf16.mxu1 %v1215_v41 }
  0x67   :  { %371 = vmatmul.mubr.bf16.gmra.mrb[8].mxu0 %v1216_v42 }
  0x68   :  { %753 = vmatmul.mubr.bf16.gmra.mrb[8].mxu1 %v1217_v43  ;;  %378 = vmatprep.mubr.bf16.mxu0 %v1218_v44 }
  0x69   :  { %760 = vmatprep.mubr.bf16.mxu1 %v1219_v45 }
  0x6f   :  { %379 = vmatmul.mubr.bf16.gmra.mrb[12].mxu0 %v1220_v46 }
  0x70   :  { %761 = vmatmul.mubr.bf16.gmra.mrb[12].mxu1 %v1221_v47  ;;  %386 = vmatprep.mubr.bf16.mxu0 %v1222_v48 }
  0x71   :  { %768 = vmatprep.mubr.bf16.mxu1 %v1223_v49 }
  0x77   :  { %387 = vmatmul.mubr.bf16.gmra.mrb[16].mxu0 %v1224_v50 }
  0x78   :  { %769 = vmatmul.mubr.bf16.gmra.mrb[16].mxu1 %v1225_v51  ;;  %394 = vmatprep.mubr.bf16.mxu0 %v1226_v52 }
  0x79   :  { %776 = vmatprep.mubr.bf16.mxu1 %v1227_v53 }
  0x7f   :  { %395 = vmatmul.mubr.bf16.gmra.mrb[20].mxu0 %v1228_v54 }
  0x80   :  { %777 = vmatmul.mubr.bf16.gmra.mrb[20].mxu1 %v1229_v55  ;;  %402 = vmatprep.mubr.bf16.mxu0 %v1230_v56 }
  0x81   :  { %784 = vmatprep.mubr.bf16.mxu1 %v1231_v57 }
  0x87   :  { %403 = vmatmul.mubr.bf16.gmra.mrb[24].mxu0 %v1232_v58 }
  0x88   :  { %785 = vmatmul.mubr.bf16.gmra.mrb[24].mxu1 %v1233_v59  ;;  %410 = vmatprep.mubr.bf16.mxu0 %v1234_v60 }
  0x89   :  { %792 = vmatprep.mubr.bf16.mxu1 %v1235_v61 }
  0x8f   :  { %411 = vmatmul.mubr.bf16.gmra.mrb[28].mxu0 %v1236_v62 }
  0x90   :  { %793 = vmatmul.mubr.bf16.gmra.mrb[28].mxu1 %v1237_v63 }
 0x12a   :  { %v1054_v0 = vpop.f32.mrb[0].mxu0 }
 0x12b   :  { %v1118_v1 = vpop.f32.mrb[0].mxu1  ;;  %v1055_v2 = vpop.f32.mrb[1].mxu0 }
 0x12c   :  { %v1056_v3 = vadd.f32 %v1055_v2, %v1054_v0  ;;  %v1119_v4 = vpop.f32.mrb[1].mxu1  ;;  %v1057_v5 = vpop.f32.mrb[2].mxu0 }
 0x12d   :  { %v1120_v6 = vadd.f32 %v1119_v4, %v1118_v1  ;;  %v1121_v7 = vpop.f32.mrb[2].mxu1  ;;  %v1058_v8 = vpop.f32.mrb[3].mxu0 }
 0x12e   :  { %v1059_v9 = vadd.f32 %v1058_v8, %v1057_v5  ;;  %v1122_v10 = vpop.f32.mrb[3].mxu1 }
 0x12f   :  { %v1022_v11 = vpack.c.bf16 %v1120_v6, %v1056_v3  ;;  %v1123_v12 = vadd.f32 %v1122_v10, %v1121_v7 }
 0x131   :  { %889 = vst [vmem:[#allocation9] sm:$0xff] %v1022_v11  ;;  %v1023_v13 = vpack.c.bf16 %v1123_v12, %v1059_v9 }
 0x132   :  { %v1060_v14 = vpop.f32.mrb[4].mxu0 }
 0x133   :  { %890 = vst [vmem:[#allocation9 + $0x8] sm:$0xff] %v1023_v13  ;;  %v1124_v15 = vpop.f32.mrb[4].mxu1  ;;  %v1061_v16 = vpop.f32.mrb[5].mxu0 }
 0x134   :  { %v1062_v17 = vadd.f32 %v1061_v16, %v1060_v14  ;;  %v1125_v18 = vpop.f32.mrb[5].mxu1  ;;  %v1063_v19 = vpop.f32.mrb[6].mxu0 }
 0x135   :  { %v1126_v20 = vadd.f32 %v1125_v18, %v1124_v15  ;;  %v1127_v21 = vpop.f32.mrb[6].mxu1  ;;  %v1064_v22 = vpop.f32.mrb[7].mxu0 }
 0x136   :  { %v1065_v23 = vadd.f32 %v1064_v22, %v1063_v19  ;;  %v1128_v24 = vpop.f32.mrb[7].mxu1 }
 0x137   :  { %v1024_v25 = vpack.c.bf16 %v1126_v20, %v1062_v17  ;;  %v1129_v26 = vadd.f32 %v1128_v24, %v1127_v21 }
 0x139   :  { %891 = vst [vmem:[#allocation9 + $0x10] sm:$0xff] %v1024_v25  ;;  %v1025_v27 = vpack.c.bf16 %v1129_v26, %v1065_v23 }
 0x13a   :  { %v1066_v28 = vpop.f32.mrb[8].mxu0 }
 0x13b   :  { %892 = vst [vmem:[#allocation9 + $0x18] sm:$0xff] %v1025_v27  ;;  %v1130_v29 = vpop.f32.mrb[8].mxu1  ;;  %v1067_v30 = vpop.f32.mrb[9].mxu0 }
 0x13c   :  { %v1068_v31 = vadd.f32 %v1067_v30, %v1066_v28  ;;  %v1131_v32 = vpop.f32.mrb[9].mxu1  ;;  %v1069_v33 = vpop.f32.mrb[10].mxu0 }
 0x13d   :  { %v1132_v34 = vadd.f32 %v1131_v32, %v1130_v29  ;;  %v1133_v35 = vpop.f32.mrb[10].mxu1  ;;  %v1070_v36 = vpop.f32.mrb[11].mxu0 }
 0x13e   :  { %v1071_v37 = vadd.f32 %v1070_v36, %v1069_v33  ;;  %v1134_v38 = vpop.f32.mrb[11].mxu1 }
 0x13f   :  { %v1026_v39 = vpack.c.bf16 %v1132_v34, %v1068_v31  ;;  %v1135_v40 = vadd.f32 %v1134_v38, %v1133_v35 }
 0x141   :  { %893 = vst [vmem:[#allocation9 + $0x20] sm:$0xff] %v1026_v39  ;;  %v1027_v41 = vpack.c.bf16 %v1135_v40, %v1071_v37 }
 0x142   :  { %v1072_v42 = vpop.f32.mrb[12].mxu0 }
 0x143   :  { %894 = vst [vmem:[#allocation9 + $0x28] sm:$0xff] %v1027_v41  ;;  %v1136_v43 = vpop.f32.mrb[12].mxu1  ;;  %v1073_v44 = vpop.f32.mrb[13].mxu0 }
 0x144   :  { %v1074_v45 = vadd.f32 %v1073_v44, %v1072_v42  ;;  %v1137_v46 = vpop.f32.mrb[13].mxu1  ;;  %v1075_v47 = vpop.f32.mrb[14].mxu0 }
 0x145   :  { %v1138_v48 = vadd.f32 %v1137_v46, %v1136_v43  ;;  %v1139_v49 = vpop.f32.mrb[14].mxu1  ;;  %v1076_v50 = vpop.f32.mrb[15].mxu0 }
 0x146   :  { %v1077_v51 = vadd.f32 %v1076_v50, %v1075_v47  ;;  %v1140_v52 = vpop.f32.mrb[15].mxu1 }
 0x147   :  { %v1028_v53 = vpack.c.bf16 %v1138_v48, %v1074_v45  ;;  %v1141_v54 = vadd.f32 %v1140_v52, %v1139_v49 }
 0x149   :  { %895 = vst [vmem:[#allocation9 + $0x30] sm:$0xff] %v1028_v53  ;;  %v1029_v55 = vpack.c.bf16 %v1141_v54, %v1077_v51 }
 0x14a   :  { %v1078_v56 = vpop.f32.mrb[16].mxu0 }
 0x14b   :  { %896 = vst [vmem:[#allocation9 + $0x38] sm:$0xff] %v1029_v55  ;;  %v1142_v57 = vpop.f32.mrb[16].mxu1  ;;  %v1079_v58 = vpop.f32.mrb[17].mxu0 }
 0x14c   :  { %v1080_v59 = vadd.f32 %v1079_v58, %v1078_v56  ;;  %v1143_v60 = vpop.f32.mrb[17].mxu1  ;;  %v1081_v61 = vpop.f32.mrb[18].mxu0 }
 0x14d   :  { %v1144_v62 = vadd.f32 %v1143_v60, %v1142_v57  ;;  %v1145_v63 = vpop.f32.mrb[18].mxu1  ;;  %v1082_v0 = vpop.f32.mrb[19].mxu0 }
 0x14e   :  { %v1083_v1 = vadd.f32 %v1082_v0, %v1081_v61  ;;  %v1146_v2 = vpop.f32.mrb[19].mxu1 }
 0x14f   :  { %v1030_v3 = vpack.c.bf16 %v1144_v62, %v1080_v59  ;;  %v1147_v4 = vadd.f32 %v1146_v2, %v1145_v63 }
 0x151   :  { %897 = vst [vmem:[#allocation9 + $0x40] sm:$0xff] %v1030_v3  ;;  %v1031_v5 = vpack.c.bf16 %v1147_v4, %v1083_v1 }
 0x152   :  { %v1084_v6 = vpop.f32.mrb[20].mxu0 }
 0x153   :  { %898 = vst [vmem:[#allocation9 + $0x48] sm:$0xff] %v1031_v5  ;;  %v1148_v7 = vpop.f32.mrb[20].mxu1  ;;  %v1085_v8 = vpop.f32.mrb[21].mxu0 }
 0x154   :  { %v1086_v9 = vadd.f32 %v1085_v8, %v1084_v6  ;;  %v1149_v10 = vpop.f32.mrb[21].mxu1  ;;  %v1087_v11 = vpop.f32.mrb[22].mxu0 }
 0x155   :  { %v1150_v12 = vadd.f32 %v1149_v10, %v1148_v7  ;;  %v1151_v13 = vpop.f32.mrb[22].mxu1  ;;  %v1088_v14 = vpop.f32.mrb[23].mxu0 }
 0x156   :  { %v1089_v15 = vadd.f32 %v1088_v14, %v1087_v11  ;;  %v1152_v16 = vpop.f32.mrb[23].mxu1 }
 0x157   :  { %v1032_v17 = vpack.c.bf16 %v1150_v12, %v1086_v9  ;;  %v1153_v18 = vadd.f32 %v1152_v16, %v1151_v13 }
 0x159   :  { %899 = vst [vmem:[#allocation9 + $0x50] sm:$0xff] %v1032_v17  ;;  %v1033_v19 = vpack.c.bf16 %v1153_v18, %v1089_v15 }
 0x15a   :  { %v1090_v20 = vpop.f32.mrb[24].mxu0 }
 0x15b   :  { %900 = vst [vmem:[#allocation9 + $0x58] sm:$0xff] %v1033_v19  ;;  %v1154_v21 = vpop.f32.mrb[24].mxu1  ;;  %v1091_v22 = vpop.f32.mrb[25].mxu0 }
 0x15c   :  { %v1092_v23 = vadd.f32 %v1091_v22, %v1090_v20  ;;  %v1155_v24 = vpop.f32.mrb[25].mxu1  ;;  %v1093_v25 = vpop.f32.mrb[26].mxu0 }
 0x15d   :  { %v1156_v26 = vadd.f32 %v1155_v24, %v1154_v21  ;;  %v1157_v27 = vpop.f32.mrb[26].mxu1  ;;  %v1094_v28 = vpop.f32.mrb[27].mxu0 }
 0x15e   :  { %v1095_v29 = vadd.f32 %v1094_v28, %v1093_v25  ;;  %v1158_v30 = vpop.f32.mrb[27].mxu1 }
 0x15f   :  { %v1034_v31 = vpack.c.bf16 %v1156_v26, %v1092_v23  ;;  %v1159_v32 = vadd.f32 %v1158_v30, %v1157_v27 }
 0x161   :  { %901 = vst [vmem:[#allocation9 + $0x60] sm:$0xff] %v1034_v31  ;;  %v1035_v33 = vpack.c.bf16 %v1159_v32, %v1095_v29 }
 0x162   :  { %v1096_v34 = vpop.f32.mrb[28].mxu0 }
 0x163   :  { %902 = vst [vmem:[#allocation9 + $0x68] sm:$0xff] %v1035_v33  ;;  %v1160_v35 = vpop.f32.mrb[28].mxu1  ;;  %v1097_v36 = vpop.f32.mrb[29].mxu0 }
 0x164   :  { %v1098_v37 = vadd.f32 %v1097_v36, %v1096_v34  ;;  %v1161_v38 = vpop.f32.mrb[29].mxu1  ;;  %v1099_v39 = vpop.f32.mrb[30].mxu0 }
 0x165   :  { %v1162_v40 = vadd.f32 %v1161_v38, %v1160_v35  ;;  %v1163_v41 = vpop.f32.mrb[30].mxu1  ;;  %v1100_v42 = vpop.f32.mrb[31].mxu0 }
 0x166   :  { %v1101_v43 = vadd.f32 %v1100_v42, %v1099_v39  ;;  %v1164_v44 = vpop.f32.mrb[31].mxu1 }
 0x167   :  { %v1036_v45 = vpack.c.bf16 %v1162_v40, %v1098_v37  ;;  %v1165_v46 = vadd.f32 %v1164_v44, %v1163_v41 }
 0x169   :  { %903 = vst [vmem:[#allocation9 + $0x70] sm:$0xff] %v1036_v45  ;;  %v1037_v47 = vpack.c.bf16 %v1165_v46, %v1101_v43 }
 0x16b   :  { %904 = vst [vmem:[#allocation9 + $0x78] sm:$0xff] %v1037_v47 }
 0x16c   :  { %909 = vsyncadd [#allocation6], 1792  ;;  %s1329_s15 = smov [#allocation9]  }
 0x16d   :  { %s910_s16 = sshll.u32 %s1329_s15, 4  ;;  %s911_s16 = int_to_ptr.vmem [resolvable:$true] %s910_s16 }
 0x16e   :  { %s1292_s17 = scalar_lea.vmem %s911_s16, 256  ;;  %s1296_s18 = scalar_lea.vmem %s911_s16, 2048 }
 0x16f   :  { %p1293_p5 = scmp.ne.s32.totalorder %s911_s16, %s1292_s17  ;;  %p1297_p6 = scmp.lt.s32.totalorder %s911_s16, %s911_s16 }
 0x170   :  { %p1298_p7 = scmp.lt.s32.totalorder %s1296_s18, %s1292_s17 }
 0x172   :  { %p1299_p8 = por %p1298_p7, %p1297_p6 }
 0x174   :  { %p1300_p9 = pnand %p1299_p8, %p1293_p5 }
 0x176   :  { %1303 = shalt.err (!%p1300_p9)
}
 0x177   :  { %s1304_s20 = scalar_lea.hbm %s1464_s3, 256 }
 0x178   :  { %p1305_p10 = scmp.ne.s32.totalorder %s1464_s3, %s1304_s20  ;;  %p1308_p11 = scmp.lt.u32.totalorder %s1304_s20, %s1464_s3 }
 0x17a   :  { %p1310_p12 = pnand %p1308_p11, %p1305_p10 }
 0x17c   :  { %1313 = shalt.err (!%p1310_p12)
}
 0x17d   :  { %916 = dma.vmem_to_hbm [thread:$0]  %s911_s16, 256, %s1464_s3, [#allocation6], %s1324_s5, %s1324_s5, %s1325_s6  }
 0x17e   :  { %1320 = dma.done.wait [#allocation6], 2048  }
 0x17f   :  { %1321 = vsyncadd [#allocation6], 4294965248 }
 0x180   :  { %920 = vsyncpa [#allocation5], 1 }
 0x181   :  { %921 = vsyncpa [#allocation8], 1 }
 0x182   :  { %922 = vsyncpa [#allocation6], 1 }

// kernel: tpu_custom_call.1
= control target key start
LH: loop header
LB: loop body
LE: loop exit
PB: predicated region body
PF: predicated region fallthrough
CT: control target
= control target key end

     0   :  { %s1461_s0 = inlined_call_operand.hbm [shape: s32[2,2], index: 0, kind: input, shape index: {}]   ;;  %s1462_s1 = inlined_call_operand.hbm [shape: bf16[16,256], index: 1, kind: input, shape index: {}]   ;;  %s1463_s2 = inlined_call_operand.hbm [shape: bf16[2,256,128], index: 2, kind: input, shape index: {}]   ;;  %s1464_s3 = inlined_call_operand.hbm [shape: bf16[16,256], index: 3, kind: output, shape index: {}]  }
   0x1   :  { %s1238_s14 = scalar_lea.hbm %s1461_s0, 32 }
   0x2   :  { %p1239_p0 = scmp.ne.s32.totalorder %s1461_s0, %s1238_s14  ;;  %p1242_p1 = scmp.lt.u32.totalorder %s1238_s14, %s1461_s0 }
   0x4   :  { %p1244_p2 = pnand %p1242_p1, %p1239_p0 }
   0x6   :  { %1247 = shalt.err (!%p1244_p2)  }
   0x7   :  { %s1322_s19 = smov [#allocation3]  }
   0x8   :  { %9 = dma.hbm_to_smem %s1461_s0, 32, %s1322_s19, [#allocation2] }
   0x9   :  { %1314 = dma.done.wait [#allocation2], 32 }
   0xa   :  { %1315 = vsyncadd [#allocation2], 4294967264 }
   0xb   :  { %11 = sfence }
   0xc   :  { %12 = vsyncpa [#allocation5], 0 }
   0xd   :  { %13 = vsyncpa [#allocation8], 0 }
   0xe   :  { %14 = vsyncpa [#allocation6], 0 }
   0xf   :  { %19 = vsyncadd [#allocation5], 1792  ;;  %s1323_s22 = smov [#allocation4]   ;;  %s1248_s26 = scalar_lea.hbm %s1462_s1, 256 }
  0x10   :  { %s20_s23 = sshll.u32 %s1323_s22, 4  ;;  %p1249_p3 = scmp.ne.s32.totalorder %s1462_s1, %s1248_s26  ;;  %s21_s23 = int_to_ptr.vmem [resolvable:$true] %s20_s23 }
  0x11   :  { %p1252_p4 = scmp.lt.u32.totalorder %s1248_s26, %s1462_s1 }
  0x13   :  { %p1254_p5 = pnand %p1252_p4, %p1249_p3 }
  0x15   :  { %1257 = shalt.err (!%p1254_p5)
}
  0x16   :  { %s1258_s30 = scalar_lea.vmem %s21_s23, 256  ;;  %s1262_s4 = scalar_lea.vmem %s21_s23, 2048 }
  0x17   :  { %p1259_p6 = scmp.ne.s32.totalorder %s21_s23, %s1258_s30  ;;  %p1263_p7 = scmp.lt.s32.totalorder %s21_s23, %s21_s23 }
  0x18   :  { %p1264_p8 = scmp.lt.s32.totalorder %s1262_s4, %s1258_s30 }
  0x1a   :  { %p1265_p9 = por %p1264_p8, %p1263_p7 }
  0x1c   :  { %p1266_p10 = pnand %p1265_p9, %p1259_p6 }
  0x1e   :  { %1269 = shalt.err (!%p1266_p10)
}
  0x1f   :  { %s1324_s5 = smov 128   ;;  %s1325_s6 = smov 8  }
  0x20   :  { %26 = dma.hbm_to_vmem [thread:$0]  %s1462_s1, 256, %s21_s23, [#allocation5], %s1324_s5, %s1324_s5, %s1325_s6  }
  0x21   :  { %s1326_s9 = smov [#allocation7]   ;;  %s1270_s13 = scalar_lea.hbm %s1463_s2, 4096 }
  0x22   :  { %s32_s10 = sshll.u32 %s1326_s9, 4  ;;  %p1271_p11 = scmp.ne.s32.totalorder %s1463_s2, %s1270_s13  ;;  %s33_s10 = int_to_ptr.vmem [resolvable:$true] %s32_s10 }
  0x23   :  { %p1274_p12 = scmp.lt.u32.totalorder %s1270_s13, %s1463_s2 }
  0x25   :  { %p1276_p13 = pnand %p1274_p12, %p1271_p11 }
  0x27   :  { %1279 = shalt.err (!%p1276_p13)
}
  0x28   :  { %s1280_s18 = scalar_lea.vmem %s33_s10, 4096  ;;  %p1285_p1 = scmp.lt.s32.totalorder %s33_s10, %s33_s10 }
  0x29   :  { %p1281_p0 = scmp.ne.s32.totalorder %s33_s10, %s1280_s18  ;;  %p1286_p2 = scmp.lt.s32.totalorder %s1280_s18, %s1280_s18 }
  0x2b   :  { %p1287_p3 = por %p1286_p2, %p1285_p1 }
  0x2d   :  { %p1288_p4 = pnand %p1287_p3, %p1281_p0 }
  0x2f   :  { %1291 = shalt.err (!%p1288_p4)
}
  0x30   :  { %s1327_s1 = smov 64   ;;  %s1328_s19 = smov 4  }
  0x31   :  { %38 = dma.hbm_to_vmem [thread:$0]  %s1463_s2, 4096, %s33_s10, [#allocation8], %s1327_s1, %s1327_s1, %s1328_s19  }
  0x32   :  { %1316 = dma.done.wait [#allocation5], 2048  }
  0x33   :  { %1317 = vsyncadd [#allocation5], 4294965248 }
  0x34   :  { %1318 = dma.done.wait [#allocation8], 4096  }
  0x35   :  { %1319 = vsyncadd [#allocation8], 4294963200  ;;  %s1389_s22 = sld [smem:[#allocation3 + $0x80]]  ;;  %s1391_s23 = sld [smem:[#allocation3 + $0x81]]  ;;  %v1174_v0 = vld [vmem:[#allocation7 + $0x40] sm:$0xff]   ;;  %v1178_v4 = vld [vmem:[#allocation7 + $0x48] sm:$0xff]  }
  0x36   :  { %s1393_s24 = sld [smem:[#allocation3]]  ;;  %s1395_s25 = sld [smem:[#allocation3 + $0x1]]  ;;  %v1175_v1 = vld [vmem:[#allocation7 + $0xc0] sm:$0xff]   ;;  %1038 = vmatprep.subr.bf16.mxu0 %v1174_v0  ;;  %v1179_v5 = vld [vmem:[#allocation7 + $0xc8] sm:$0xff]   ;;  %v1182_v8 = vld [vmem:[#allocation7 + $0x50] sm:$0xff]  }
  0x37   :  { %v1176_v2 = vld [vmem:[#allocation7] sm:$0xff]   ;;  %1102 = vmatprep.subr.bf16.mxu1 %v1175_v1  ;;  %v1180_v6 = vld [vmem:[#allocation7 + $0x8] sm:$0xff]   ;;  %v1183_v9 = vld [vmem:[#allocation7 + $0xd0] sm:$0xff]  }
  0x38   :  { %v1177_v3 = vld [vmem:[#allocation7 + $0x80] sm:$0xff]   ;;  %1039 = vmatpush3.bf16.msra.mxu0 %v1176_v2  ;;  %v1181_v7 = vld [vmem:[#allocation7 + $0x88] sm:$0xff]   ;;  %v1184_v10 = vld [vmem:[#allocation7 + $0x10] sm:$0xff]  }
  0x39   :  { %1103 = vmatpush3.bf16.msra.mxu1 %v1177_v3  ;;  %1040 = vmatprep.subr.bf16.mxu0 %v1178_v4  ;;  %v1185_v11 = vld [vmem:[#allocation7 + $0x90] sm:$0xff]   ;;  %v1186_v12 = vld [vmem:[#allocation7 + $0x58] sm:$0xff]   ;;  %v1190_v16 = vld [vmem:[#allocation7 + $0x60] sm:$0xff]  }
  0x3a   :  { %1104 = vmatprep.subr.bf16.mxu1 %v1179_v5  ;;  %v1187_v13 = vld [vmem:[#allocation7 + $0xd8] sm:$0xff]   ;;  %v1191_v17 = vld [vmem:[#allocation7 + $0xe0] sm:$0xff]   ;;  %v1194_v20 = vld [vmem:[#allocation7 + $0x68] sm:$0xff]  }
  0x3b   :  { %s934_s2 = sshll.u32 %s1389_s22, 7  ;;  %v1188_v14 = vld [vmem:[#allocation7 + $0x18] sm:$0xff]   ;;  %v1192_v18 = vld [vmem:[#allocation7 + $0x20] sm:$0xff]   ;;  %s972_s28 = sshll.u32 %s1391_s23, 7  ;;  %v1195_v21 = vld [vmem:[#allocation7 + $0xe8] sm:$0xff]  }
  0x3c   :  { %1041 = vmatpush3.bf16.msra.mxu0 %v1180_v6  ;;  %s1398_s26 = sshra.s32 %s934_s2, 7  ;;  %v1189_v15 = vld [vmem:[#allocation7 + $0x98] sm:$0xff]   ;;  %v1193_v19 = vld [vmem:[#allocation7 + $0xa0] sm:$0xff]   ;;  %s931_s29 = sshll.u32 %s1393_s24, 7  ;;  %v1196_v22 = vld [vmem:[#allocation7 + $0x28] sm:$0xff]  }
  0x3d   :  { %1105 = vmatpush3.bf16.msra.mxu1 %v1181_v7  ;;  %1042 = vmatprep.subr.bf16.mxu0 %v1182_v8  ;;  %s935_s27 = sshll.u32 %s1398_s26, 2  ;;  %s969_s0 = sshll.u32 %s1395_s25, 7  ;;  %v1197_v23 = vld [vmem:[#allocation7 + $0xa8] sm:$0xff]   ;;  %v1198_v24 = vld [vmem:[#allocation7 + $0x70] sm:$0xff]   ;;  %v1202_v28 = vld [vmem:[#allocation7 + $0x78] sm:$0xff]  }
  0x3e   :  { %1106 = vmatprep.subr.bf16.mxu1 %v1183_v9  ;;  %s459_s30 = sshra.s32 %s972_s28, 7  ;;  %s49_s4 = sshra.s32 %s931_s29, 7  ;;  %v1199_v25 = vld [vmem:[#allocation7 + $0xf0] sm:$0xff]   ;;  %v1203_v29 = vld [vmem:[#allocation7 + $0xf8] sm:$0xff]  }
  0x3f   :  { %s430_s7 = sshra.s32 %s969_s0, 7  ;;  %v1200_v26 = vld [vmem:[#allocation7 + $0x30] sm:$0xff]   ;;  %s973_s8 = sshll.u32 %s459_s30, 2  ;;  %v1204_v30 = vld [vmem:[#allocation7 + $0x38] sm:$0xff]  }
  0x40   :  { %1043 = vmatpush3.bf16.msra.mxu0 %v1184_v10  ;;  %v1201_v27 = vld [vmem:[#allocation7 + $0xb0] sm:$0xff]   ;;  %s932_s9 = sshll.u32 %s49_s4, 2  ;;  %s970_s10 = sshll.u32 %s430_s7, 2  ;;  %v1205_v31 = vld [vmem:[#allocation7 + $0xb8] sm:$0xff]  }
  0x41   :  { %1107 = vmatpush3.bf16.msra.mxu1 %v1185_v11  ;;  %1044 = vmatprep.subr.bf16.mxu0 %v1186_v12  ;;  %s1406_s11 = scalar_lea.vmem [#allocation4], %s935_s27  ;;  %s1409_s12 = scalar_lea.vmem [#allocation4], %s973_s8 }
  0x42   :  { %1108 = vmatprep.subr.bf16.mxu1 %v1187_v13  ;;  %v1206_v32 = vld [vmem:[%s1406_s11] ss:$8 sps:$4 sm:$0xff]   ;;  %s1412_s13 = scalar_lea.vmem [#allocation4], %s932_s9  ;;  %s1415_s14 = scalar_lea.vmem [#allocation4], %s970_s10  ;;  %v1210_v36 = vld [vmem:[%s1406_s11 + $0x10] ss:$8 sps:$4 sm:$0xff]  }
  0x43   :  { %v1207_v33 = vld [vmem:[%s1409_s12] ss:$8 sps:$4 sm:$0xff]   ;;  %354 = vmatprep.mubr.bf16.mxu0 %v1206_v32  ;;  %v1211_v37 = vld [vmem:[%s1409_s12 + $0x10] ss:$8 sps:$4 sm:$0xff]  }
  0x44   :  { %1045 = vmatpush3.bf16.msra.mxu0 %v1188_v14  ;;  %v1208_v34 = vld [vmem:[%s1412_s13] ss:$8 sps:$4 sm:$0xff]   ;;  %736 = vmatprep.mubr.bf16.mxu1 %v1207_v33  ;;  %v1212_v38 = vld [vmem:[%s1412_s13 + $0x10] ss:$8 sps:$4 sm:$0xff]  }
  0x45   :  { %1109 = vmatpush3.bf16.msra.mxu1 %v1189_v15  ;;  %1046 = vmatprep.subr.bf16.mxu0 %v1190_v16  ;;  %v1209_v35 = vld [vmem:[%s1415_s14] ss:$8 sps:$4 sm:$0xff]   ;;  %v1213_v39 = vld [vmem:[%s1415_s14 + $0x10] ss:$8 sps:$4 sm:$0xff]  }
  0x46   :  { %1110 = vmatprep.subr.bf16.mxu1 %v1191_v17  ;;  %v1214_v40 = vld [vmem:[%s1406_s11 + $0x20] ss:$8 sps:$4 sm:$0xff]   ;;  %v1218_v44 = vld [vmem:[%s1406_s11 + $0x30] ss:$8 sps:$4 sm:$0xff]  }
  0x47   :  { %v1215_v41 = vld [vmem:[%s1409_s12 + $0x20] ss:$8 sps:$4 sm:$0xff]   ;;  %v1219_v45 = vld [vmem:[%s1409_s12 + $0x30] ss:$8 sps:$4 sm:$0xff]  }
  0x48   :  { %1047 = vmatpush3.bf16.msra.mxu0 %v1192_v18  ;;  %v1216_v42 = vld [vmem:[%s1412_s13 + $0x20] ss:$8 sps:$4 sm:$0xff]   ;;  %v1220_v46 = vld [vmem:[%s1412_s13 + $0x30] ss:$8 sps:$4 sm:$0xff]  }
  0x49   :  { %1111 = vmatpush3.bf16.msra.mxu1 %v1193_v19  ;;  %1048 = vmatprep.subr.bf16.mxu0 %v1194_v20  ;;  %v1217_v43 = vld [vmem:[%s1415_s14 + $0x20] ss:$8 sps:$4 sm:$0xff]   ;;  %v1221_v47 = vld [vmem:[%s1415_s14 + $0x30] ss:$8 sps:$4 sm:$0xff]  }
  0x4a   :  { %1112 = vmatprep.subr.bf16.mxu1 %v1195_v21  ;;  %v1222_v48 = vld [vmem:[%s1406_s11 + $0x40] ss:$8 sps:$4 sm:$0xff]   ;;  %v1226_v52 = vld [vmem:[%s1406_s11 + $0x50] ss:$8 sps:$4 sm:$0xff]  }
  0x4b   :  { %v1223_v49 = vld [vmem:[%s1409_s12 + $0x40] ss:$8 sps:$4 sm:$0xff]   ;;  %v1227_v53 = vld [vmem:[%s1409_s12 + $0x50] ss:$8 sps:$4 sm:$0xff]  }
  0x4c   :  { %1049 = vmatpush3.bf16.msra.mxu0 %v1196_v22  ;;  %v1224_v50 = vld [vmem:[%s1412_s13 + $0x40] ss:$8 sps:$4 sm:$0xff]   ;;  %v1228_v54 = vld [vmem:[%s1412_s13 + $0x50] ss:$8 sps:$4 sm:$0xff]  }
  0x4d   :  { %1113 = vmatpush3.bf16.msra.mxu1 %v1197_v23  ;;  %1050 = vmatprep.subr.bf16.mxu0 %v1198_v24  ;;  %v1225_v51 = vld [vmem:[%s1415_s14 + $0x40] ss:$8 sps:$4 sm:$0xff]   ;;  %v1229_v55 = vld [vmem:[%s1415_s14 + $0x50] ss:$8 sps:$4 sm:$0xff]  }
  0x4e   :  { %1114 = vmatprep.subr.bf16.mxu1 %v1199_v25  ;;  %v1230_v56 = vld [vmem:[%s1406_s11 + $0x60] ss:$8 sps:$4 sm:$0xff]   ;;  %v1234_v60 = vld [vmem:[%s1406_s11 + $0x70] ss:$8 sps:$4 sm:$0xff]  }
  0x4f   :  { %v1231_v57 = vld [vmem:[%s1409_s12 + $0x60] ss:$8 sps:$4 sm:$0xff]   ;;  %v1235_v61 = vld [vmem:[%s1409_s12 + $0x70] ss:$8 sps:$4 sm:$0xff]  }
  0x50   :  { %1051 = vmatpush3.bf16.msra.mxu0 %v1200_v26  ;;  %v1232_v58 = vld [vmem:[%s1412_s13 + $0x60] ss:$8 sps:$4 sm:$0xff]   ;;  %v1236_v62 = vld [vmem:[%s1412_s13 + $0x70] ss:$8 sps:$4 sm:$0xff]  }
  0x51   :  { %1115 = vmatpush3.bf16.msra.mxu1 %v1201_v27  ;;  %1052 = vmatprep.subr.bf16.mxu0 %v1202_v28  ;;  %v1233_v59 = vld [vmem:[%s1415_s14 + $0x60] ss:$8 sps:$4 sm:$0xff]   ;;  %v1237_v63 = vld [vmem:[%s1415_s14 + $0x70] ss:$8 sps:$4 sm:$0xff]  }
  0x52   :  { %1116 = vmatprep.subr.bf16.mxu1 %v1203_v29 }
  0x54   :  { %1053 = vmatpush3.bf16.msra.mxu0 %v1204_v30 }
  0x55   :  { %1117 = vmatpush3.bf16.msra.mxu1 %v1205_v31 }
  0x57   :  { %355 = vmatmul.mubr.bf16.vlgmr.msra.gmra.mrb[0].mxu0 %v1208_v34 }
  0x58   :  { %737 = vmatmul.mubr.bf16.vlgmr.msra.gmra.mrb[0].mxu1 %v1209_v35  ;;  %362 = vmatprep.mubr.bf16.mxu0 %v1210_v36 }
  0x59   :  { %744 = vmatprep.mubr.bf16.mxu1 %v1211_v37 }
  0x5f   :  { %363 = vmatmul.mubr.bf16.gmra.mrb[4].mxu0 %v1212_v38 }
  0x60   :  { %745 = vmatmul.mubr.bf16.gmra.mrb[4].mxu1 %v1213_v39  ;;  %370 = vmatprep.mubr.bf16.mxu0 %v1214_v40 }
  0x61   :  { %752 = vmatprep.mubr.bf16.mxu1 %v1215_v41 }
  0x67   :  { %371 = vmatmul.mubr.bf16.gmra.mrb[8].mxu0 %v1216_v42 }
  0x68   :  { %753 = vmatmul.mubr.bf16.gmra.mrb[8].mxu1 %v1217_v43  ;;  %378 = vmatprep.mubr.bf16.mxu0 %v1218_v44 }
  0x69   :  { %760 = vmatprep.mubr.bf16.mxu1 %v1219_v45 }
  0x6f   :  { %379 = vmatmul.mubr.bf16.gmra.mrb[12].mxu0 %v1220_v46 }
  0x70   :  { %761 = vmatmul.mubr.bf16.gmra.mrb[12].mxu1 %v1221_v47  ;;  %386 = vmatprep.mubr.bf16.mxu0 %v1222_v48 }
  0x71   :  { %768 = vmatprep.mubr.bf16.mxu1 %v1223_v49 }
  0x77   :  { %387 = vmatmul.mubr.bf16.gmra.mrb[16].mxu0 %v1224_v50 }
  0x78   :  { %769 = vmatmul.mubr.bf16.gmra.mrb[16].mxu1 %v1225_v51  ;;  %394 = vmatprep.mubr.bf16.mxu0 %v1226_v52 }
  0x79   :  { %776 = vmatprep.mubr.bf16.mxu1 %v1227_v53 }
  0x7f   :  { %395 = vmatmul.mubr.bf16.gmra.mrb[20].mxu0 %v1228_v54 }
  0x80   :  { %777 = vmatmul.mubr.bf16.gmra.mrb[20].mxu1 %v1229_v55  ;;  %402 = vmatprep.mubr.bf16.mxu0 %v1230_v56 }
  0x81   :  { %784 = vmatprep.mubr.bf16.mxu1 %v1231_v57 }
  0x87   :  { %403 = vmatmul.mubr.bf16.gmra.mrb[24].mxu0 %v1232_v58 }
  0x88   :  { %785 = vmatmul.mubr.bf16.gmra.mrb[24].mxu1 %v1233_v59  ;;  %410 = vmatprep.mubr.bf16.mxu0 %v1234_v60 }
  0x89   :  { %792 = vmatprep.mubr.bf16.mxu1 %v1235_v61 }
  0x8f   :  { %411 = vmatmul.mubr.bf16.gmra.mrb[28].mxu0 %v1236_v62 }
  0x90   :  { %793 = vmatmul.mubr.bf16.gmra.mrb[28].mxu1 %v1237_v63 }
 0x12a   :  { %v1054_v0 = vpop.f32.mrb[0].mxu0 }
 0x12b   :  { %v1118_v1 = vpop.f32.mrb[0].mxu1  ;;  %v1055_v2 = vpop.f32.mrb[1].mxu0 }
 0x12c   :  { %v1056_v3 = vadd.f32 %v1055_v2, %v1054_v0  ;;  %v1119_v4 = vpop.f32.mrb[1].mxu1  ;;  %v1057_v5 = vpop.f32.mrb[2].mxu0 }
 0x12d   :  { %v1120_v6 = vadd.f32 %v1119_v4, %v1118_v1  ;;  %v1121_v7 = vpop.f32.mrb[2].mxu1  ;;  %v1058_v8 = vpop.f32.mrb[3].mxu0 }
 0x12e   :  { %v1059_v9 = vadd.f32 %v1058_v8, %v1057_v5  ;;  %v1122_v10 = vpop.f32.mrb[3].mxu1 }
 0x12f   :  { %v1022_v11 = vpack.c.bf16 %v1120_v6, %v1056_v3  ;;  %v1123_v12 = vadd.f32 %v1122_v10, %v1121_v7 }
 0x131   :  { %889 = vst [vmem:[#allocation9] sm:$0xff] %v1022_v11  ;;  %v1023_v13 = vpack.c.bf16 %v1123_v12, %v1059_v9 }
 0x132   :  { %v1060_v14 = vpop.f32.mrb[4].mxu0 }
 0x133   :  { %890 = vst [vmem:[#allocation9 + $0x8] sm:$0xff] %v1023_v13  ;;  %v1124_v15 = vpop.f32.mrb[4].mxu1  ;;  %v1061_v16 = vpop.f32.mrb[5].mxu0 }
 0x134   :  { %v1062_v17 = vadd.f32 %v1061_v16, %v1060_v14  ;;  %v1125_v18 = vpop.f32.mrb[5].mxu1  ;;  %v1063_v19 = vpop.f32.mrb[6].mxu0 }
 0x135   :  { %v1126_v20 = vadd.f32 %v1125_v18, %v1124_v15  ;;  %v1127_v21 = vpop.f32.mrb[6].mxu1  ;;  %v1064_v22 = vpop.f32.mrb[7].mxu0 }
 0x136   :  { %v1065_v23 = vadd.f32 %v1064_v22, %v1063_v19  ;;  %v1128_v24 = vpop.f32.mrb[7].mxu1 }
 0x137   :  { %v1024_v25 = vpack.c.bf16 %v1126_v20, %v1062_v17  ;;  %v1129_v26 = vadd.f32 %v1128_v24, %v1127_v21 }
 0x139   :  { %891 = vst [vmem:[#allocation9 + $0x10] sm:$0xff] %v1024_v25  ;;  %v1025_v27 = vpack.c.bf16 %v1129_v26, %v1065_v23 }
 0x13a   :  { %v1066_v28 = vpop.f32.mrb[8].mxu0 }
 0x13b   :  { %892 = vst [vmem:[#allocation9 + $0x18] sm:$0xff] %v1025_v27  ;;  %v1130_v29 = vpop.f32.mrb[8].mxu1  ;;  %v1067_v30 = vpop.f32.mrb[9].mxu0 }
 0x13c   :  { %v1068_v31 = vadd.f32 %v1067_v30, %v1066_v28  ;;  %v1131_v32 = vpop.f32.mrb[9].mxu1  ;;  %v1069_v33 = vpop.f32.mrb[10].mxu0 }
 0x13d   :  { %v1132_v34 = vadd.f32 %v1131_v32, %v1130_v29  ;;  %v1133_v35 = vpop.f32.mrb[10].mxu1  ;;  %v1070_v36 = vpop.f32.mrb[11].mxu0 }
 0x13e   :  { %v1071_v37 = vadd.f32 %v1070_v36, %v1069_v33  ;;  %v1134_v38 = vpop.f32.mrb[11].mxu1 }
 0x13f   :  { %v1026_v39 = vpack.c.bf16 %v1132_v34, %v1068_v31  ;;  %v1135_v40 = vadd.f32 %v1134_v38, %v1133_v35 }
 0x141   :  { %893 = vst [vmem:[#allocation9 + $0x20] sm:$0xff] %v1026_v39  ;;  %v1027_v41 = vpack.c.bf16 %v1135_v40, %v1071_v37 }
 0x142   :  { %v1072_v42 = vpop.f32.mrb[12].mxu0 }
 0x143   :  { %894 = vst [vmem:[#allocation9 + $0x28] sm:$0xff] %v1027_v41  ;;  %v1136_v43 = vpop.f32.mrb[12].mxu1  ;;  %v1073_v44 = vpop.f32.mrb[13].mxu0 }
 0x144   :  { %v1074_v45 = vadd.f32 %v1073_v44, %v1072_v42  ;;  %v1137_v46 = vpop.f32.mrb[13].mxu1  ;;  %v1075_v47 = vpop.f32.mrb[14].mxu0 }
 0x145   :  { %v1138_v48 = vadd.f32 %v1137_v46, %v1136_v43  ;;  %v1139_v49 = vpop.f32.mrb[14].mxu1  ;;  %v1076_v50 = vpop.f32.mrb[15].mxu0 }
 0x146   :  { %v1077_v51 = vadd.f32 %v1076_v50, %v1075_v47  ;;  %v1140_v52 = vpop.f32.mrb[15].mxu1 }
 0x147   :  { %v1028_v53 = vpack.c.bf16 %v1138_v48, %v1074_v45  ;;  %v1141_v54 = vadd.f32 %v1140_v52, %v1139_v49 }
 0x149   :  { %895 = vst [vmem:[#allocation9 + $0x30] sm:$0xff] %v1028_v53  ;;  %v1029_v55 = vpack.c.bf16 %v1141_v54, %v1077_v51 }
 0x14a   :  { %v1078_v56 = vpop.f32.mrb[16].mxu0 }
 0x14b   :  { %896 = vst [vmem:[#allocation9 + $0x38] sm:$0xff] %v1029_v55  ;;  %v1142_v57 = vpop.f32.mrb[16].mxu1  ;;  %v1079_v58 = vpop.f32.mrb[17].mxu0 }
 0x14c   :  { %v1080_v59 = vadd.f32 %v1079_v58, %v1078_v56  ;;  %v1143_v60 = vpop.f32.mrb[17].mxu1  ;;  %v1081_v61 = vpop.f32.mrb[18].mxu0 }
 0x14d   :  { %v1144_v62 = vadd.f32 %v1143_v60, %v1142_v57  ;;  %v1145_v63 = vpop.f32.mrb[18].mxu1  ;;  %v1082_v0 = vpop.f32.mrb[19].mxu0 }
 0x14e   :  { %v1083_v1 = vadd.f32 %v1082_v0, %v1081_v61  ;;  %v1146_v2 = vpop.f32.mrb[19].mxu1 }
 0x14f   :  { %v1030_v3 = vpack.c.bf16 %v1144_v62, %v1080_v59  ;;  %v1147_v4 = vadd.f32 %v1146_v2, %v1145_v63 }
 0x151   :  { %897 = vst [vmem:[#allocation9 + $0x40] sm:$0xff] %v1030_v3  ;;  %v1031_v5 = vpack.c.bf16 %v1147_v4, %v1083_v1 }
 0x152   :  { %v1084_v6 = vpop.f32.mrb[20].mxu0 }
 0x153   :  { %898 = vst [vmem:[#allocation9 + $0x48] sm:$0xff] %v1031_v5  ;;  %v1148_v7 = vpop.f32.mrb[20].mxu1  ;;  %v1085_v8 = vpop.f32.mrb[21].mxu0 }
 0x154   :  { %v1086_v9 = vadd.f32 %v1085_v8, %v1084_v6  ;;  %v1149_v10 = vpop.f32.mrb[21].mxu1  ;;  %v1087_v11 = vpop.f32.mrb[22].mxu0 }
 0x155   :  { %v1150_v12 = vadd.f32 %v1149_v10, %v1148_v7  ;;  %v1151_v13 = vpop.f32.mrb[22].mxu1  ;;  %v1088_v14 = vpop.f32.mrb[23].mxu0 }
 0x156   :  { %v1089_v15 = vadd.f32 %v1088_v14, %v1087_v11  ;;  %v1152_v16 = vpop.f32.mrb[23].mxu1 }
 0x157   :  { %v1032_v17 = vpack.c.bf16 %v1150_v12, %v1086_v9  ;;  %v1153_v18 = vadd.f32 %v1152_v16, %v1151_v13 }
 0x159   :  { %899 = vst [vmem:[#allocation9 + $0x50] sm:$0xff] %v1032_v17  ;;  %v1033_v19 = vpack.c.bf16 %v1153_v18, %v1089_v15 }
 0x15a   :  { %v1090_v20 = vpop.f32.mrb[24].mxu0 }
 0x15b   :  { %900 = vst [vmem:[#allocation9 + $0x58] sm:$0xff] %v1033_v19  ;;  %v1154_v21 = vpop.f32.mrb[24].mxu1  ;;  %v1091_v22 = vpop.f32.mrb[25].mxu0 }
 0x15c   :  { %v1092_v23 = vadd.f32 %v1091_v22, %v1090_v20  ;;  %v1155_v24 = vpop.f32.mrb[25].mxu1  ;;  %v1093_v25 = vpop.f32.mrb[26].mxu0 }
 0x15d   :  { %v1156_v26 = vadd.f32 %v1155_v24, %v1154_v21  ;;  %v1157_v27 = vpop.f32.mrb[26].mxu1  ;;  %v1094_v28 = vpop.f32.mrb[27].mxu0 }
 0x15e   :  { %v1095_v29 = vadd.f32 %v1094_v28, %v1093_v25  ;;  %v1158_v30 = vpop.f32.mrb[27].mxu1 }
 0x15f   :  { %v1034_v31 = vpack.c.bf16 %v1156_v26, %v1092_v23  ;;  %v1159_v32 = vadd.f32 %v1158_v30, %v1157_v27 }
 0x161   :  { %901 = vst [vmem:[#allocation9 + $0x60] sm:$0xff] %v1034_v31  ;;  %v1035_v33 = vpack.c.bf16 %v1159_v32, %v1095_v29 }
 0x162   :  { %v1096_v34 = vpop.f32.mrb[28].mxu0 }
 0x163   :  { %902 = vst [vmem:[#allocation9 + $0x68] sm:$0xff] %v1035_v33  ;;  %v1160_v35 = vpop.f32.mrb[28].mxu1  ;;  %v1097_v36 = vpop.f32.mrb[29].mxu0 }
 0x164   :  { %v1098_v37 = vadd.f32 %v1097_v36, %v1096_v34  ;;  %v1161_v38 = vpop.f32.mrb[29].mxu1  ;;  %v1099_v39 = vpop.f32.mrb[30].mxu0 }
 0x165   :  { %v1162_v40 = vadd.f32 %v1161_v38, %v1160_v35  ;;  %v1163_v41 = vpop.f32.mrb[30].mxu1  ;;  %v1100_v42 = vpop.f32.mrb[31].mxu0 }
 0x166   :  { %v1101_v43 = vadd.f32 %v1100_v42, %v1099_v39  ;;  %v1164_v44 = vpop.f32.mrb[31].mxu1 }
 0x167   :  { %v1036_v45 = vpack.c.bf16 %v1162_v40, %v1098_v37  ;;  %v1165_v46 = vadd.f32 %v1164_v44, %v1163_v41 }
 0x169   :  { %903 = vst [vmem:[#allocation9 + $0x70] sm:$0xff] %v1036_v45  ;;  %v1037_v47 = vpack.c.bf16 %v1165_v46, %v1101_v43 }
 0x16b   :  { %904 = vst [vmem:[#allocation9 + $0x78] sm:$0xff] %v1037_v47 }
 0x16c   :  { %909 = vsyncadd [#allocation6], 1792  ;;  %s1329_s15 = smov [#allocation9]  }
 0x16d   :  { %s910_s16 = sshll.u32 %s1329_s15, 4  ;;  %s911_s16 = int_to_ptr.vmem [resolvable:$true] %s910_s16 }
 0x16e   :  { %s1292_s17 = scalar_lea.vmem %s911_s16, 256  ;;  %s1296_s18 = scalar_lea.vmem %s911_s16, 2048 }
 0x16f   :  { %p1293_p5 = scmp.ne.s32.totalorder %s911_s16, %s1292_s17  ;;  %p1297_p6 = scmp.lt.s32.totalorder %s911_s16, %s911_s16 }
 0x170   :  { %p1298_p7 = scmp.lt.s32.totalorder %s1296_s18, %s1292_s17 }
 0x172   :  { %p1299_p8 = por %p1298_p7, %p1297_p6 }
 0x174   :  { %p1300_p9 = pnand %p1299_p8, %p1293_p5 }
 0x176   :  { %1303 = shalt.err (!%p1300_p9)
}
 0x177   :  { %s1304_s20 = scalar_lea.hbm %s1464_s3, 256 }
 0x178   :  { %p1305_p10 = scmp.ne.s32.totalorder %s1464_s3, %s1304_s20  ;;  %p1308_p11 = scmp.lt.u32.totalorder %s1304_s20, %s1464_s3 }
 0x17a   :  { %p1310_p12 = pnand %p1308_p11, %p1305_p10 }
 0x17c   :  { %1313 = shalt.err (!%p1310_p12)
}
 0x17d   :  { %916 = dma.vmem_to_hbm [thread:$0]  %s911_s16, 256, %s1464_s3, [#allocation6], %s1324_s5, %s1324_s5, %s1325_s6  }
 0x17e   :  { %1320 = dma.done.wait [#allocation6], 2048  }
 0x17f   :  { %1321 = vsyncadd [#allocation6], 4294965248 }
 0x180   :  { %920 = vsyncpa [#allocation5], 1 }
 0x181   :  { %921 = vsyncpa [#allocation8], 1 }
 0x182   :  { %922 = vsyncpa [#allocation6], 1 }

</bundles_post_ra>
